<compile_context>
chip_gen: v6e
topology: v6e:2x2x1
jax: 0.10.0
libtpu: 0.0.40
codegen_flags: <defaults>
</compile_context>

<pallas_src>
import jax
import jax.numpy as jnp
from jax import lax
from jax.experimental import pallas as pl
from jax.experimental.pallas import tpu as pltpu


def _lovasz_hinge_kernel(err_row_ref, lab_row_ref, err_col_ref, out_ref):
    """One grid step = Bt images.

    err_row_ref, lab_row_ref : (Bt, 1, P)   lane-dense hinge errors / labels
    err_col_ref              : (Bt, P, 1)   same errors, column (sublane) layout
    out_ref                  : (Bt, 1, 128) per-image loss broadcast over lanes
    """
    Bt, _, P = err_row_ref.shape

    err_row = err_row_ref[...]                     # (Bt, 1, P)
    lab_row = lab_row_ref[...]                     # (Bt, 1, P)
    err_col = err_col_ref[...]                     # (Bt, P, 1)

    # cmpT[b, j, i] = 1 iff element j is ranked strictly before element i in a
    # stable descending sort of image b's errors (ties broken by lower index).
    # The tie-break matrix is index-only, so it is built once per step (shared
    # across the Bt images) and broadcast along the batch axis.
    idx_j = lax.broadcasted_iota(jnp.int32, (1, P, P), 1)
    idx_i = lax.broadcasted_iota(jnp.int32, (1, P, P), 2)
    tiebreak = idx_j < idx_i                       # (1, P, P)

    greater = err_col > err_row                    # (Bt, P, P)
    equal = err_col == err_row
    cmpT = jnp.where(greater | (equal & tiebreak), 1.0, 0.0).astype(jnp.bfloat16)

    # Single MXU contraction: [ones; labels] (Bt,2,P) x cmpT (Bt,P,P) ->
    #   row 0: rank_i = #elements ranked before i
    #   row 1: wsum_i = sum of labels of elements ranked before i
    # 0/1 operands in bf16 with f32 accumulation are exact (sums <= P = 256).
    lhs = jnp.concatenate([jnp.ones_like(lab_row), lab_row], axis=1).astype(jnp.bfloat16)
    red = jnp.einsum("bkj,bji->bki", lhs, cmpT,
                     preferred_element_type=jnp.float32)       # (Bt, 2, P)
    rank = red[:, 0:1, :]                                      # (Bt, 1, P)
    wsum = red[:, 1:2, :]                                      # (Bt, 1, P)

    # Pointwise Lovász gradient, expressed in the ORIGINAL index order
    # (no errors_sorted / gt_sorted vectors are ever materialized).
    gts = jnp.sum(lab_row, axis=2, keepdims=True)              # (Bt, 1, 1)
    cum_gt = wsum + lab_row                # cumsum(gt_sorted) at position rank_i
    pos = rank + 1.0                       # 1-based sorted position of element i

    jac = 1.0 - (gts - cum_gt) / (gts + pos - cum_gt)
    jac_prev = jnp.where(rank > 0.0,
                         1.0 - (gts - wsum) / (gts + rank - wsum),
                         0.0)
    grad = jac - jac_prev                  # lovasz_grad(gt_sorted), permuted back

    loss = jnp.sum(jnp.maximum(err_row, 0.0) * grad, axis=2, keepdims=True)  # (Bt,1,1)
    out_ref[...] = jnp.broadcast_to(loss, (Bt, 1, out_ref.shape[-1]))


def _pick_bt(B):
    """Largest images-per-step in {8,4,2,1} dividing B while keeping >=2 grid steps."""
    for bt in (8, 4, 2, 1):
        if B % bt == 0 and (B // bt) >= 2:
            return bt
    return 1


def lovasz_hinge_loss(inp, tgt):
    """inp, tgt: (B, 1, H, W) float arrays; returns scalar mean per-image loss."""
    B, C, H, W = inp.shape
    assert C == 1, "LovaszHingeLoss expects a single channel (squeeze(1))"
    P = H * W

    logits = inp.astype(jnp.float32).reshape(B, P)
    labels = tgt.astype(jnp.float32).reshape(B, P)
    # Hinge errors computed once on the host (tiny fused elementwise op); the
    # kernel consumes a lane-dense row view and a column view (layout plumbing
    # only — avoids an in-kernel (1,P)->(P,1) relayout and any lane-sparse VPU work).
    errors = 1.0 - logits * (2.0 * labels - 1.0)

    err_row = errors.reshape(B, 1, P)
    lab_row = labels.reshape(B, 1, P)
    err_col = errors.reshape(B, P, 1)

    bt = _pick_bt(B)
    grid = (B // bt,)

    out = pl.pallas_call(
        _lovasz_hinge_kernel,
        out_shape=jax.ShapeDtypeStruct((B, 1, 128), jnp.float32),
        grid_spec=pltpu.PrefetchScalarGridSpec(
            num_scalar_prefetch=0,
            grid=grid,
            in_specs=[
                pl.BlockSpec((bt, 1, P), lambda b: (b, 0, 0)),
                pl.BlockSpec((bt, 1, P), lambda b: (b, 0, 0)),
                pl.BlockSpec((bt, P, 1), lambda b: (b, 0, 0)),
            ],
            out_specs=pl.BlockSpec((bt, 1, 128), lambda b: (b, 0, 0)),
        ),
        compiler_params=pltpu.CompilerParams(dimension_semantics=("parallel",)),
    )(err_row, lab_row, err_col)

    per_image = out[:, 0, 0]   # (B,)
    return per_image.mean()


def _lovasz_hinge_ref(inp, tgt):
    """Pure-JAX reference (mirrors the PyTorch implementation)."""
    B = inp.shape[0]
    logits = inp.astype(jnp.float32).reshape(B, -1)
    labels = tgt.astype(jnp.float32).reshape(B, -1)

    def per_img(lg, lb):
        signs = 2.0 * lb - 1.0
        errors = 1.0 - lg * signs
        order = jnp.argsort(-errors)        # descending, stable
        e_sorted = errors[order]
        gt_sorted = lb[order]
        gts = gt_sorted.sum()
        intersection = gts - jnp.cumsum(gt_sorted)
        union = gts + jnp.cumsum(1.0 - gt_sorted)
        jac = 1.0 - intersection / union
        grad = jnp.concatenate([jac[:1], jac[1:] - jac[:-1]])
        return jnp.sum(jnp.maximum(e_sorted, 0.0) * grad)

    return jax.vmap(per_img)(logits, labels).mean()


if __name__ == "__main__":
    key = jax.random.PRNGKey(0)
    k1, k2 = jax.random.split(key)
    B, C, H, W = 2, 1, 16, 16
    inp = jax.random.normal(k1, (B, C, H, W), dtype=jnp.float32)
    tgt = (jax.random.uniform(k2, (B, C, H, W)) > 0.5).astype(jnp.float32)

    loss = lovasz_hinge_loss(inp, tgt)
    jax.block_until_ready(loss)

    ref = _lovasz_hinge_ref(inp, tgt)
    assert jnp.allclose(loss, ref, rtol=1e-5, atol=1e-5), (loss, ref)

    print("KERNEL_OK")
</pallas_src>

<mosaic_0001>
module attributes {stable_mosaic.version = 11 : i64} {
  func.func @_lovasz_hinge_kernel(%arg0: i32, %arg1: memref<1x1x256xf32, #tpu.memory_space<vmem>>, %arg2: memref<1x1x256xf32, #tpu.memory_space<vmem>>, %arg3: memref<1x256x1xf32, #tpu.memory_space<vmem>>, %arg4: memref<1x1x128xf32, #tpu.memory_space<vmem>>) attributes {dimension_semantics = [#tpu.dimension_semantics<parallel>], iteration_bounds = array<i64: 2>, scalar_prefetch = 0 : i64, scratch_operands = 0 : i64, tpu.core_type = #tpu.core_type<tc>, window_params = [{transform_indices = @transform_0, window_bounds = array<i64: 1, 1, 256>}, {transform_indices = @transform_1, window_bounds = array<i64: 1, 1, 256>}, {transform_indices = @transform_2, window_bounds = array<i64: 1, 256, 1>}, {transform_indices = @transform_3, window_bounds = array<i64: 1, 1, 128>}]} {
    %c0 = arith.constant 0 : index
    %c0_0 = arith.constant 0 : index
    %c0_1 = arith.constant 0 : index
    %0 = vector.load %arg1[%c0, %c0_0, %c0_1] : memref<1x1x256xf32, #tpu.memory_space<vmem>>, vector<1x1x256xf32>
    %c0_2 = arith.constant 0 : index
    %c0_3 = arith.constant 0 : index
    %c0_4 = arith.constant 0 : index
    %1 = vector.load %arg2[%c0_2, %c0_3, %c0_4] : memref<1x1x256xf32, #tpu.memory_space<vmem>>, vector<1x1x256xf32>
    %c0_5 = arith.constant 0 : index
    %c0_6 = arith.constant 0 : index
    %c0_7 = arith.constant 0 : index
    %2 = vector.load %arg3[%c0_5, %c0_6, %c0_7] : memref<1x256x1xf32, #tpu.memory_space<vmem>>, vector<1x256x1xf32>
    %3 = tpu.iota {dimensions = array<i32: 1>} : vector<1x256x256xi32>
    %4 = tpu.iota {dimensions = array<i32: 2>} : vector<1x256x256xi32>
    %5 = arith.cmpi slt, %3, %4 : vector<1x256x256xi32>
    %6 = vector.broadcast %2 : vector<1x256x1xf32> to vector<1x256x256xf32>
    %7 = vector.broadcast %0 : vector<1x1x256xf32> to vector<1x256x256xf32>
    %8 = arith.cmpf ogt, %6, %7 : vector<1x256x256xf32>
    %9 = vector.broadcast %2 : vector<1x256x1xf32> to vector<1x256x256xf32>
    %10 = vector.broadcast %0 : vector<1x1x256xf32> to vector<1x256x256xf32>
    %11 = arith.cmpf oeq, %9, %10 : vector<1x256x256xf32>
    %12 = arith.andi %11, %5 : vector<1x256x256xi1>
    %13 = arith.ori %8, %12 : vector<1x256x256xi1>
    %cst = arith.constant 1.000000e+00 : f32
    %cst_8 = arith.constant 0.000000e+00 : f32
    %14 = vector.broadcast %cst : f32 to vector<1x256x256xf32>
    %15 = vector.broadcast %cst_8 : f32 to vector<1x256x256xf32>
    %16 = arith.select %13, %14, %15 : vector<1x256x256xi1>, vector<1x256x256xf32>
    %17 = arith.truncf %16 : vector<1x256x256xf32> to vector<1x256x256xbf16>
    %cst_9 = arith.constant 1.000000e+00 : f32
    %18 = vector.broadcast %cst_9 : f32 to vector<1x1x256xf32>
    %19 = tpu.concatenate %18, %1 in 1 : vector<1x1x256xf32>, vector<1x1x256xf32> -> vector<1x2x256xf32>
    %20 = arith.truncf %19 : vector<1x2x256xf32> to vector<1x2x256xbf16>
    "tpu.trace_start"() <{level = 10 : i32, message = "bkj,bji->bki"}> : () -> ()
    %cst_10 = arith.constant dense<0.000000e+00> : vector<1x2x256xf32>
    %21 = tpu.matmul %20, %17, %cst_10 {dimension_numbers = #tpu.dot_dimension_numbers<[2], [1], [1], [2], [0, 0, 0, 1, 1, 2], [0], [0]>} : vector<1x2x256xbf16>, vector<1x256x256xbf16>, vector<1x2x256xf32> -> vector<1x2x256xf32>
    "tpu.trace_stop"() : () -> ()
    %22 = vector.extract_strided_slice %21 {offsets = [0, 0, 0], sizes = [1, 1, 256], strides = [1, 1, 1]} : vector<1x2x256xf32> to vector<1x1x256xf32>
    %23 = vector.extract_strided_slice %21 {offsets = [0, 1, 0], sizes = [1, 1, 256], strides = [1, 1, 1]} : vector<1x2x256xf32> to vector<1x1x256xf32>
    %cst_11 = arith.constant dense<0.000000e+00> : vector<1x1xf32>
    %24 = vector.multi_reduction <add>, %1, %cst_11 [2] : vector<1x1x256xf32> to vector<1x1xf32>
    %25 = vector.shape_cast %24 : vector<1x1xf32> to vector<1x1x1xf32>
    %26 = arith.addf %23, %1 : vector<1x1x256xf32>
    %cst_12 = arith.constant 1.000000e+00 : f32
    %27 = vector.broadcast %cst_12 : f32 to vector<1x1x256xf32>
    %28 = arith.addf %22, %27 : vector<1x1x256xf32>
    %29 = vector.broadcast %25 : vector<1x1x1xf32> to vector<1x1x256xf32>
    %30 = arith.subf %29, %26 : vector<1x1x256xf32>
    %31 = vector.broadcast %25 : vector<1x1x1xf32> to vector<1x1x256xf32>
    %32 = arith.addf %31, %28 : vector<1x1x256xf32>
    %33 = arith.subf %32, %26 : vector<1x1x256xf32>
    %34 = arith.divf %30, %33 : vector<1x1x256xf32>
    %cst_13 = arith.constant 1.000000e+00 : f32
    %35 = vector.broadcast %cst_13 : f32 to vector<1x1x256xf32>
    %36 = arith.subf %35, %34 : vector<1x1x256xf32>
    %cst_14 = arith.constant 0.000000e+00 : f32
    %37 = vector.broadcast %cst_14 : f32 to vector<1x1x256xf32>
    %38 = arith.cmpf ogt, %22, %37 : vector<1x1x256xf32>
    %39 = vector.broadcast %25 : vector<1x1x1xf32> to vector<1x1x256xf32>
    %40 = arith.subf %39, %23 : vector<1x1x256xf32>
    %41 = vector.broadcast %25 : vector<1x1x1xf32> to vector<1x1x256xf32>
    %42 = arith.addf %41, %22 : vector<1x1x256xf32>
    %43 = arith.subf %42, %23 : vector<1x1x256xf32>
    %44 = arith.divf %40, %43 : vector<1x1x256xf32>
    %cst_15 = arith.constant 1.000000e+00 : f32
    %45 = vector.broadcast %cst_15 : f32 to vector<1x1x256xf32>
    %46 = arith.subf %45, %44 : vector<1x1x256xf32>
    %cst_16 = arith.constant 0.000000e+00 : f32
    %47 = vector.broadcast %cst_16 : f32 to vector<1x1x256xf32>
    %48 = arith.select %38, %46, %47 : vector<1x1x256xi1>, vector<1x1x256xf32>
    %49 = arith.subf %36, %48 : vector<1x1x256xf32>
    %cst_17 = arith.constant 0.000000e+00 : f32
    %50 = vector.broadcast %cst_17 : f32 to vector<1x1x256xf32>
    %51 = arith.maximumf %0, %50 : vector<1x1x256xf32>
    %52 = arith.mulf %51, %49 : vector<1x1x256xf32>
    %cst_18 = arith.constant dense<0.000000e+00> : vector<1x1xf32>
    %53 = vector.multi_reduction <add>, %52, %cst_18 [2] : vector<1x1x256xf32> to vector<1x1xf32>
    %54 = vector.shape_cast %53 : vector<1x1xf32> to vector<1x1x1xf32>
    %55 = vector.shape_cast %54 : vector<1x1x1xf32> to vector<1x1x1xf32>
    %56 = vector.broadcast %55 : vector<1x1x1xf32> to vector<1x1x128xf32>
    %c0_19 = arith.constant 0 : index
    %c0_20 = arith.constant 0 : index
    %c0_21 = arith.constant 0 : index
    %57 = vector.load %arg4[%c0_19, %c0_20, %c0_21] : memref<1x1x128xf32, #tpu.memory_space<vmem>>, vector<1x1x128xf32>
    tpu.vector_store %arg4[%c0_19, %c0_20, %c0_21], %56 {strides = array<i32>} : memref<1x1x128xf32, #tpu.memory_space<vmem>>, vector<1x1x128xf32>,
    return
  }
  func.func @transform_0(%arg0: i32) -> (i32, i32, i32) {
    %c0_i32 = arith.constant 0 : i32
    %c0_i32_0 = arith.constant 0 : i32
    %c0_i32_1 = arith.constant 0 : i32
    return %arg0, %c0_i32, %c0_i32_0 : i32, i32, i32
  }
  func.func @transform_1(%arg0: i32) -> (i32, i32, i32) {
    %c0_i32 = arith.constant 0 : i32
    %c0_i32_0 = arith.constant 0 : i32
    %c0_i32_1 = arith.constant 0 : i32
    return %arg0, %c0_i32, %c0_i32_0 : i32, i32, i32
  }
  func.func @transform_2(%arg0: i32) -> (i32, i32, i32) {
    %c0_i32 = arith.constant 0 : i32
    %c0_i32_0 = arith.constant 0 : i32
    %c0_i32_1 = arith.constant 0 : i32
    return %arg0, %c0_i32, %c0_i32_0 : i32, i32, i32
  }
  func.func @transform_3(%arg0: i32) -> (i32, i32, i32) {
    %c0_i32 = arith.constant 0 : i32
    %c0_i32_0 = arith.constant 0 : i32
    %c0_i32_1 = arith.constant 0 : i32
    return %arg0, %c0_i32, %c0_i32_0 : i32, i32, i32
  }
}

</mosaic_0001>

<bundles_post_ra>
// kernel: tpu_custom_call.1
= control target key start
LH: loop header
LB: loop body
LE: loop exit
PB: predicated region body
PF: predicated region fallthrough
CT: control target
= control target key end

     0   :  { %8 = vsyncpa [#allocation3], 0  ;;  %s1864_s0 = inlined_call_operand.vmem [shape: f32[2,1,256], index: 0, kind: input, shape index: {}]   ;;  %s1865_s1 = inlined_call_operand.vmem [shape: f32[2,1,256], index: 1, kind: input, shape index: {}]   ;;  %s1866_s2 = inlined_call_operand.vmem [shape: f32[2,256,1], index: 2, kind: input, shape index: {}]   ;;  %s1867_s3 = inlined_call_operand.hbm [shape: f32[2,1,128], index: 3, kind: output, shape index: {}]  }
   0x1   :  { %10 = vsyncpa [#allocation3 + $0x1], 0  ;;  %s1310_s12 = smov 0   ;;  %s1312_s13 = smov 0  }
   0x2   :  { %s1314_s14 = smov 0   ;;  %s1316_s15 = smov 0  }
   0x3 LB: > { %s1331_s16 = sadd.s32 4294967295, %s1284_s15   ;;  %s1096_s17 = sadd.s32 4294967294, %s1284_s15   ;;  %s1284_s15 = sphi %s1316_s15, %s1920_s15   ;;  %s1280_s14 = sphi %s1314_s14, %s1919_s14   ;;  %s1276_s13 = sphi %s1312_s13, %s1918_s13   ;;  %s1272_s12 = sphi %s1310_s12, %s1917_s12  }
   0x4   : > { %s1335_s18 = sadd.s32 1, %s1284_s15   ;;  %s101_s19 = sadd.s32 1, %s1280_s14 }
   0x5   : > { %s98_s20 = ssub.s32 %s1284_s15, %s1335_s18  ;;  %p111_p0 = scmp.ne.s32.totalorder %s1280_s14, %s1276_s13 }
   0x6   : > { %p99_p1 = scmp.eq.s32.totalorder %s98_s20, 0  ;;  %p112_p2 = scmp.eq.s32.totalorder %s1331_s16, 1 }
   0x7   : > { %p117_p3 = scmp.ne.s32.totalorder %s1276_s13, %s1272_s12  ;;  %p118_p4 = scmp.eq.s32.totalorder %s1096_s17, 1 }
   0x8   : > { %s1346_s21 = scalar_select %p99_p1, %s1280_s14, %s101_s19  }
   0x9   : > { %p1348_p5 = por %p112_p2, %p111_p0  ;;  %p1352_p6 = por %p118_p4, %p117_p3 }
   0xa   : > { %p1099_p7 = scmp.ge.s32.totalorder %s1284_s15, 1  ;;  %p158_p8 = scmp.lt.s32.totalorder %s1284_s15, 3 }
   0xc   : > { %p159_p9 = pnand %p1099_p7, %p158_p8 }
   0xd   : > { %p189_p10 = scmp.lt.s32.totalorder (!%p159_p9), %s1331_s16, 1  ;;  %s187_s9 = sand.u32 (!%p159_p9), 1, %s1276_s13  }
   0xe   : > { %162 = sbr.rel (%p159_p9) target bundleno = 650 (0x28a), region = 32  ;;  %s188_s10 = scalar_lea.vmem (!%p159_p9), [#allocation2], %s187_s9 }
   0xf   : > { %s1017_s11 = sshll.u32 (!%p159_p9), %s188_s10, 4  ;;  %s1168_s17 = sshll.u32 (!%p159_p9), %s1331_s16, 4  ;;  %s1826_s11 = int_to_ptr.vmem [resolvable:$true] %s1017_s11 }
  0x10   : > { %s1224_s26 = scalar_lea.vmem (!%p159_p9), %s1826_s11, 16  ;;  %s1289_s27 = smov (!%p159_p9), [#allocation2]  }
  0x11   : > { %p1225_p11 = scmp.ne.s32.totalorder (!%p159_p9), %s1826_s11, %s1224_s26 }
  0x13   : > { %v1286_v0 = vmov 0   ;;  %s1360_s24 = scalar_select %p189_p10, %s1331_s16, 1  ;;  %v236_v33 = vlaneseq  ;;  %vm1868_vm0 = vcmask 1040384   ;;  %v1287_v60 = vmov 1.0|1.0  }
  0x14   : > { %1215 = vset.pattern.permute.xlu1 %v1286_v0  ;;  %1214 = vset.pattern.permute.xlu0 %v1286_v0  ;;  %p1226_p12 = pnand %p1225_p11, %p1348_p5 }
  0x15   : > { %s1171_s25 = sshll.u32 %s1360_s24, 8  ;;  %v1400_v34 = vshrl.u32 %v236_v33, 7  ;;  %s1100_s29 = sshll.u32 %s1360_s24, 1  ;;  %v1430_v47 = vand.u32 127, %v236_v33 }
  0x16   : > { %s1366_s28 = scalar_lea.vmem %s1866_s2, %s1171_s25  ;;  %s196_s5 = scalar_lea.vmem %s1865_s1, %s1100_s29 }
  0x17   : > { %v218_v1 = vld [vmem:[%s1366_s28 + $0x70] sm:$0xff]  ;;  %v216_v2 = vld [vmem:[%s1366_s28 + $0x60] sm:$0xff]  ;;  %v219_v3 = vld [vmem:[%s1366_s28 + $0x78] sm:$0xff]  ;;  %v1404_v35 = vsub.s32 0, %v1400_v34  ;;  %v1407_v36 = vsub.s32 1, %v1400_v34  ;;  %s192_s8 = scalar_lea.vmem %s1864_s0, %s1100_s29  ;;  %v251_v46 = vadd.s32 112, %v1400_v34  ;;  %s1015_s24 = scalar_lea.hbm %s1867_s3, %s1168_s17 }
  0x18   : > { %408 = vperm.xlu0 %1214, %v218_v1   ;;  %398 = vperm.xlu1 %1215, %v216_v2   ;;  %v217_v4 = vld [vmem:[%s1366_s28 + $0x68] sm:$0xff]  ;;  %v215_v5 = vld [vmem:[%s1366_s28 + $0x58] sm:$0xff]  ;;  %v214_v6 = vld [vmem:[%s1366_s28 + $0x50] sm:$0xff]  ;;  %v252_v52 = vadd.s32 120, %v1400_v34  ;;  %v249_v58 = vadd.s32 96, %v1400_v34  ;;  %v250_v59 = vadd.s32 104, %v1400_v34  ;;  %p1227_p13 = pneg %p1226_p12 }
  0x19   : > { %v213_v7 = vld [vmem:[%s1366_s28 + $0x48] sm:$0xff]  ;;  %v212_v8 = vld [vmem:[%s1366_s28 + $0x40] sm:$0xff]  ;;  %v211_v9 = vld [vmem:[%s1366_s28 + $0x38] sm:$0xff]  ;;  %vm300_vm1 = vcmp.lt.s32.totalorder %v251_v46, %v1430_v47  ;;  %v247_v63 = vadd.s32 80, %v1400_v34  ;;  %v248_v0 = vadd.s32 88, %v1400_v34  ;;  %v264_v33 = vadd.s32 216, %v1400_v34 }
  0x1a   : > { %v210_v10 = vld [vmem:[%s1366_s28 + $0x30] sm:$0xff]  ;;  %v209_v11 = vld [vmem:[%s1366_s28 + $0x28] sm:$0xff]  ;;  %v208_v12 = vld [vmem:[%s1366_s28 + $0x20] sm:$0xff]  ;;  %vm302_vm13 = vcmp.lt.s32.totalorder %v252_v52, %v1430_v47  ;;  %v261_v46 = vadd.s32 192, %v1400_v34  ;;  %v258_v57 = vadd.s32 168, %v1400_v34  ;;  %s1005_s25 = scalar_lea.sflag [#allocation3], %s187_s9 }
  0x1b   : > { %v207_v13 = vld [vmem:[%s1366_s28 + $0x18] sm:$0xff]  ;;  %v206_v14 = vld [vmem:[%s1366_s28 + $0x10] sm:$0xff]  ;;  %v205_v15 = vld [vmem:[%s1366_s28 + $0x8] sm:$0xff] }
  0x1c   : > { %413 = vperm.xlu0 %1214, %v219_v3   ;;  %403 = vperm.xlu1 %1215, %v217_v4   ;;  %v204_v16 = vld [vmem:[%s1366_s28] sm:$0xff]  ;;  %v235_v17 = vld [vmem:[%s1366_s28 + $0xf8] sm:$0xff]  ;;  %v234_v18 = vld [vmem:[%s1366_s28 + $0xf0] sm:$0xff]  ;;  %v245_v3 = vadd.s32 64, %v1400_v34  ;;  %v246_v4 = vadd.s32 72, %v1400_v34 }
  0x1d   : > { %v233_v19 = vld [vmem:[%s1366_s28 + $0xe8] sm:$0xff]  ;;  %v232_v20 = vld [vmem:[%s1366_s28 + $0xe0] sm:$0xff]  ;;  %v231_v21 = vld [vmem:[%s1366_s28 + $0xd8] sm:$0xff] }
  0x1e   : > { %v230_v22 = vld [vmem:[%s1366_s28 + $0xd0] sm:$0xff]  ;;  %v229_v23 = vld [vmem:[%s1366_s28 + $0xc8] sm:$0xff]  ;;  %v228_v24 = vld [vmem:[%s1366_s28 + $0xc0] sm:$0xff] }
  0x1f   : > { %v227_v25 = vld [vmem:[%s1366_s28 + $0xb8] sm:$0xff]  ;;  %v226_v26 = vld [vmem:[%s1366_s28 + $0xb0] sm:$0xff]  ;;  %v225_v27 = vld [vmem:[%s1366_s28 + $0xa8] sm:$0xff] }
  0x20   : > { %393 = vperm.xlu1 %1215, %v215_v5   ;;  %388 = vperm.xlu0 %1214, %v214_v6   ;;  %v224_v28 = vld [vmem:[%s1366_s28 + $0xa0] sm:$0xff]  ;;  %v223_v29 = vld [vmem:[%s1366_s28 + $0x98] sm:$0xff]  ;;  %v222_v30 = vld [vmem:[%s1366_s28 + $0x90] sm:$0xff] }
  0x21   : > { %v221_v31 = vld [vmem:[%s1366_s28 + $0x88] sm:$0xff]  ;;  %v220_v32 = vld [vmem:[%s1366_s28 + $0x80] sm:$0xff]  ;;  %s1228_s28 = sshll.u32 %s1289_s27, 4  ;;  %s1229_s28 = int_to_ptr.vmem [resolvable:$false] %s1228_s28 }
  0x22   : > { %v203_v37 = vld [vmem:[%s196_s5] sm:$0x3]  ;;  %s1230_s16 = scalar_lea.vmem %s1229_s28, 32  ;;  %p1231_p0 = scmp.lt.s32.totalorder %s1826_s11, %s1229_s28 }
  0x23   : > { %v1413_v38 = vrot.slane %v203_v37, %v1404_v35  ;;  %v1416_v39 = vrot.slane %v203_v37, %v1407_v36  ;;  %v1427_v45 = vld [vmem:[%s192_s8] sm:$0x3]  ;;  %p1232_p1 = scmp.lt.s32.totalorder %s1230_s16, %s1224_s26 }
  0x24   : > { %383 = vperm.xlu1 %1215, %v213_v7   ;;  %378 = vperm.xlu0 %1214, %v212_v8   ;;  %v1434_v48 = vrot.slane %v1427_v45, %v1404_v35  ;;  %v1438_v49 = vrot.slane %v1427_v45, %v1407_v36  ;;  %v243_v7 = vadd.s32 48, %v1400_v34  ;;  %v244_v8 = vadd.s32 56, %v1400_v34 }
  0x25   : > { %v872_v40 = vsel %vm1868_vm0, 1.0, %v1416_v39  ;;  %v916_v41 = vsel %vm1868_vm0, %v1413_v38, 0.0  ;;  %v917_v42 = vsel %vm1868_vm0, %v1416_v39, 0.0  ;;  %p1233_p2 = por %p1232_p1, %p1231_p0 }
  0x26   : > { %v874_v43 = vpack.c.bf16 %v872_v40, %v872_v40  ;;  %v918_v44 = vadd.f32 %v917_v42, %v916_v41  ;;  %v263_v40 = vadd.s32 208, %v1400_v34  ;;  %v262_v42 = vadd.s32 200, %v1400_v34 }
  0x27   : > { %p1234_p3 = pnand %p1233_p2, %p1227_p13 }
  0x28   : > { %373 = vperm.xlu1 %1215, %v211_v9   ;;  %368 = vperm.xlu0 %1214, %v210_v10  }
  0x29   : > { %907 = vmatprep.mubr.bf16.mxu0 %v874_v43 }
  0x2c   : > { %363 = vperm.xlu1 %1215, %v209_v11   ;;  %358 = vperm.xlu0 %1214, %v208_v12   ;;  %v241_v11 = vadd.s32 32, %v1400_v34  ;;  %v242_v12 = vadd.s32 40, %v1400_v34 }
  0x30   : > { %353 = vperm.xlu1 %1215, %v207_v13   ;;  %348 = vperm.xlu0 %1214, %v206_v14  }
  0x34   : > { %343 = vperm.xlu1 %1215, %v205_v15   ;;  %338 = vperm.xlu0 %1214, %v204_v16  }
  0x38   : > { %493 = vperm.xlu1 %1215, %v235_v17   ;;  %488 = vperm.xlu0 %1214, %v234_v18   ;;  %v239_v17 = vadd.s32 16, %v1400_v34  ;;  %v240_v18 = vadd.s32 24, %v1400_v34 }
  0x3c   : > { %483 = vperm.xlu1 %1215, %v233_v19   ;;  %478 = vperm.xlu0 %1214, %v232_v20  }
  0x40   : > { %473 = vperm.xlu1 %1215, %v231_v21   ;;  %468 = vperm.xlu0 %1214, %v230_v22   ;;  %v268_v21 = vadd.s32 248, %v1400_v34  ;;  %v1564_v22 = vadd.s32 128, %v1430_v47 }
  0x44   : > { %463 = vperm.xlu1 %1215, %v229_v23   ;;  %458 = vperm.xlu0 %1214, %v228_v24   ;;  %v267_v23 = vadd.s32 240, %v1400_v34  ;;  %v265_v24 = vadd.s32 224, %v1400_v34 }
  0x48   : > { %453 = vperm.xlu1 %1215, %v227_v25   ;;  %448 = vperm.xlu0 %1214, %v226_v26   ;;  %v266_v25 = vadd.s32 232, %v1400_v34 }
  0x4c   : > { %443 = vperm.xlu1 %1215, %v225_v27   ;;  %438 = vperm.xlu0 %1214, %v224_v28   ;;  %v238_v27 = vadd.s32 8, %v1400_v34 }
  0x50   : > { %433 = vperm.xlu1 %1215, %v223_v29   ;;  %428 = vperm.xlu0 %1214, %v222_v30   ;;  %v1877_v29 = vmov 0 }
  0x54   : > { %423 = vperm.xlu1 %1215, %v221_v31   ;;  %418 = vperm.xlu0 %1214, %v220_v32   ;;  %v1881_v31 = vmov 0 }
  0x73   : > { %919 = vadd.xlane.f32.xlu0 %v918_v44 }
  0x93   : > { %v409_v50 = vpop.permute.xlu0 %408  ;;  %v399_v51 = vpop.permute.xlu1 %398 }
  0x94   : > { %vm536_vm2 = vcmp.gt.f32.partialorder %v409_v50, %v1438_v49  ;;  %vm600_vm3 = vcmp.eq.f32.partialorder %v409_v50, %v1438_v49  ;;  %vm535_vm4 = vcmp.gt.f32.partialorder %v409_v50, %v1434_v48  ;;  %vm599_vm6 = vcmp.eq.f32.partialorder %v409_v50, %v1434_v48 }
  0x95   : > { %vm1445_vm5 = vmor %vm536_vm2, %vm600_vm3  ;;  %vm532_vm7 = vcmp.gt.f32.partialorder %v399_v51, %v1438_v49  ;;  %vm596_vm8 = vcmp.eq.f32.partialorder %v399_v51, %v1438_v49 }
  0x96   : > { %vm663_vm9 = vmand %vm599_vm6, %vm300_vm1 }
  0x97   : > { %v414_v54 = vpop.permute.xlu0 %413  ;;  %vm1452_vm10 = vmor %vm535_vm4, %vm663_vm9  ;;  %v404_v56 = vpop.permute.xlu1 %403  ;;  %vm595_vm9 = vcmp.eq.f32.partialorder %v399_v51, %v1434_v48 }
  0x98   : > { %vm538_vm11 = vcmp.gt.f32.partialorder %v414_v54, %v1438_v49  ;;  %vm602_vm12 = vcmp.eq.f32.partialorder %v414_v54, %v1438_v49  ;;  %vm1459_vm14 = vmor %vm532_vm7, %vm596_vm8  ;;  %vm537_vm2 = vcmp.gt.f32.partialorder %v414_v54, %v1434_v48  ;;  %vm601_vm1 = vcmp.eq.f32.partialorder %v414_v54, %v1434_v48 }
  0x99   : > { %vm730_vm15 = vmor %vm538_vm11, %vm602_vm12  ;;  %vm534_vm6 = vcmp.gt.f32.partialorder %v404_v56, %v1438_v49  ;;  %vm598_vm7 = vcmp.eq.f32.partialorder %v404_v56, %v1438_v49  ;;  %vm296_vm12 = vcmp.lt.s32.totalorder %v249_v58, %v1430_v47  ;;  %v259_v54 = vadd.s32 176, %v1400_v34 }
  0x9a   : > { %vm1104_vm3 = vmpackc.low %vm730_vm15, %vm1445_vm5  ;;  %vm597_vm5 = vcmp.eq.f32.partialorder %v404_v56, %v1434_v48 }
  0x9b   : > { %1105 = vmatprep.subr.msk.bf16.mxu0 %vm1104_vm3, %v1287_v60  ;;  %vm665_vm4 = vmand %vm601_vm1, %vm302_vm13  ;;  %vm298_vm3 = vcmp.lt.s32.totalorder %v250_v59, %v1430_v47  ;;  %v389_v61 = vpop.permute.xlu0 %388  ;;  %v394_v62 = vpop.permute.xlu1 %393 }
  0x9c   : > { %vm729_vm8 = vmor %vm537_vm2, %vm665_vm4  ;;  %vm531_vm2 = vcmp.gt.f32.partialorder %v399_v51, %v1434_v48  ;;  %v260_v51 = vadd.s32 184, %v1400_v34 }
  0x9d   : > { %vm1106_vm11 = vmpackc.low %vm729_vm8, %vm1452_vm10  ;;  %vm533_vm10 = vcmp.gt.f32.partialorder %v404_v56, %v1434_v48 }
  0x9e   : > { %1107 = vmatpush1.bf16.msk.msra.mxu0 %vm1106_vm11, %v1287_v60  ;;  %vm726_vm15 = vmor %vm534_vm6, %vm598_vm7  ;;  %vm528_vm6 = vcmp.gt.f32.partialorder %v389_v61, %v1438_v49  ;;  %vm592_vm7 = vcmp.eq.f32.partialorder %v389_v61, %v1438_v49 }
  0x9f   : > { %vm1108_vm13 = vmpackc.low %vm726_vm15, %vm1459_vm14  ;;  %vm530_vm14 = vcmp.gt.f32.partialorder %v394_v62, %v1438_v49  ;;  %vm594_vm15 = vcmp.eq.f32.partialorder %v394_v62, %v1438_v49  ;;  %v379_v1 = vpop.permute.xlu0 %378  ;;  %v384_v2 = vpop.permute.xlu1 %383 }
  0xa0   : > { %1109 = vmatprep.subr.msk.bf16.mxu0 %vm1108_vm13, %v1287_v60  ;;  %vm659_vm1 = vmand %vm595_vm9, %vm296_vm12  ;;  %vm591_vm13 = vcmp.eq.f32.partialorder %v389_v61, %v1434_v48  ;;  %vm292_vm12 = vcmp.lt.s32.totalorder %v247_v63, %v1430_v47 }
  0xa1   : > { %vm661_vm4 = vmand %vm597_vm5, %vm298_vm3  ;;  %vm593_vm5 = vcmp.eq.f32.partialorder %v394_v62, %v1434_v48 }
  0xa2   : > { %vm723_vm8 = vmor %vm531_vm2, %vm659_vm1  ;;  %vm294_vm2 = vcmp.lt.s32.totalorder %v248_v0, %v1430_v47  ;;  %v256_v0 = vadd.s32 152, %v1400_v34 }
  0xa3   : > { %vm725_vm11 = vmor %vm533_vm10, %vm661_vm4  ;;  %vm527_vm10 = vcmp.gt.f32.partialorder %v389_v61, %v1434_v48  ;;  %vm529_vm4 = vcmp.gt.f32.partialorder %v394_v62, %v1434_v48  ;;  %v369_v5 = vpop.permute.xlu0 %368  ;;  %v374_v6 = vpop.permute.xlu1 %373  ;;  %v257_v61 = vadd.s32 160, %v1400_v34 }
  0xa4   : > { %vm1110_vm0 = vmpackc.low %vm725_vm11, %vm723_vm8 }
  0xa5   : > { %1111 = vmatpush1.bf16.msk.msra.mxu0 %vm1110_vm0, %v1287_v60  ;;  %vm720_vm9 = vmor %vm528_vm6, %vm592_vm7  ;;  %vm524_vm6 = vcmp.gt.f32.partialorder %v379_v1, %v1438_v49  ;;  %vm588_vm7 = vcmp.eq.f32.partialorder %v379_v1, %v1438_v49 }
  0xa6   : > { %vm722_vm3 = vmor %vm530_vm14, %vm594_vm15  ;;  %vm526_vm15 = vcmp.gt.f32.partialorder %v384_v2, %v1438_v49 }
  0xa7   : > { %vm1112_vm1 = vmpackc.low %vm722_vm3, %vm720_vm9  ;;  %vm590_vm9 = vcmp.eq.f32.partialorder %v384_v2, %v1438_v49  ;;  %v359_v9 = vpop.permute.xlu0 %358  ;;  %v364_v10 = vpop.permute.xlu1 %363 }
  0xa8   : > { %1113 = vmatprep.subr.msk.bf16.mxu0 %vm1112_vm1, %v1287_v60  ;;  %vm655_vm8 = vmand %vm591_vm13, %vm292_vm12  ;;  %vm587_vm1 = vcmp.eq.f32.partialorder %v379_v1, %v1434_v48  ;;  %vm288_vm12 = vcmp.lt.s32.totalorder %v245_v3, %v1430_v47  ;;  %v255_v3 = vadd.s32 144, %v1400_v34 }
  0xa9   : > { %vm657_vm11 = vmand %vm593_vm5, %vm294_vm2  ;;  %vm589_vm5 = vcmp.eq.f32.partialorder %v384_v2, %v1434_v48 }
  0xaa   : > { %vm719_vm0 = vmor %vm527_vm10, %vm655_vm8  ;;  %vm290_vm10 = vcmp.lt.s32.totalorder %v246_v4, %v1430_v47 }
  0xab   : > { %vm721_vm14 = vmor %vm529_vm4, %vm657_vm11  ;;  %vm523_vm4 = vcmp.gt.f32.partialorder %v379_v1, %v1434_v48  ;;  %vm525_vm11 = vcmp.gt.f32.partialorder %v384_v2, %v1434_v48  ;;  %v349_v13 = vpop.permute.xlu0 %348  ;;  %v354_v14 = vpop.permute.xlu1 %353 }
  0xac   : > { %vm1114_vm3 = vmpackc.low %vm721_vm14, %vm719_vm0 }
  0xad   : > { %1115 = vmatpush1.bf16.msk.msra.mxu0 %vm1114_vm3, %v1287_v60  ;;  %vm716_vm13 = vmor %vm524_vm6, %vm588_vm7  ;;  %vm520_vm7 = vcmp.gt.f32.partialorder %v369_v5, %v1438_v49  ;;  %vm522_vm3 = vcmp.gt.f32.partialorder %v374_v6, %v1438_v49 }
  0xae   : > { %vm718_vm2 = vmor %vm526_vm15, %vm590_vm9  ;;  %vm584_vm15 = vcmp.eq.f32.partialorder %v369_v5, %v1438_v49 }
  0xaf   : > { %vm1116_vm8 = vmpackc.low %vm718_vm2, %vm716_vm13  ;;  %vm586_vm13 = vcmp.eq.f32.partialorder %v374_v6, %v1438_v49  ;;  %v1540_v15 = vpop.permute.xlu0 %338  ;;  %v1544_v16 = vpop.permute.xlu1 %343 }
  0xb0   : > { %1117 = vmatprep.subr.msk.bf16.mxu0 %vm1116_vm8, %v1287_v60  ;;  %vm651_vm0 = vmand %vm587_vm1, %vm288_vm12  ;;  %vm583_vm8 = vcmp.eq.f32.partialorder %v369_v5, %v1434_v48  ;;  %vm284_vm12 = vcmp.lt.s32.totalorder %v243_v7, %v1430_v47  ;;  %v1903_v7 = vmov 0 }
  0xb1   : > { %vm653_vm14 = vmand %vm589_vm5, %vm290_vm10  ;;  %vm585_vm5 = vcmp.eq.f32.partialorder %v374_v6, %v1434_v48 }
  0xb2   : > { %vm715_vm6 = vmor %vm523_vm4, %vm651_vm0  ;;  %vm286_vm4 = vcmp.lt.s32.totalorder %v244_v8, %v1430_v47  ;;  %vm519_vm0 = vcmp.gt.f32.partialorder %v369_v5, %v1434_v48 }
  0xb3   : > { %vm717_vm9 = vmor %vm525_vm11, %vm653_vm14  ;;  %vm521_vm14 = vcmp.gt.f32.partialorder %v374_v6, %v1434_v48  ;;  %v1555_v19 = vpop.permute.xlu0 %488  ;;  %v1558_v20 = vpop.permute.xlu1 %493  ;;  %v254_v6 = vadd.s32 136, %v1400_v34 }
  0xb4   : > { %vm1118_vm2 = vmpackc.low %vm717_vm9, %vm715_vm6 }
  0xb5   : > { %1119 = vmatpush1.bf16.msk.msra.mxu0 %vm1118_vm2, %v1287_v60  ;;  %vm712_vm1 = vmor %vm520_vm7, %vm584_vm15  ;;  %vm516_vm15 = vcmp.gt.f32.partialorder %v359_v9, %v1438_v49  ;;  %vm580_vm2 = vcmp.eq.f32.partialorder %v359_v9, %v1438_v49 }
  0xb6   : > { %vm714_vm10 = vmor %vm522_vm3, %vm586_vm13  ;;  %vm518_vm13 = vcmp.gt.f32.partialorder %v364_v10, %v1438_v49 }
  0xb7   : > { %vm1120_vm11 = vmpackc.low %vm714_vm10, %vm712_vm1  ;;  %vm582_vm1 = vcmp.eq.f32.partialorder %v364_v10, %v1438_v49  ;;  %v1577_v26 = vpop.permute.xlu0 %478  ;;  %v1584_v28 = vpop.permute.xlu1 %483 }
  0xb8   : > { %1121 = vmatprep.subr.msk.bf16.mxu0 %vm1120_vm11, %v1287_v60  ;;  %vm647_vm6 = vmand %vm583_vm8, %vm284_vm12  ;;  %vm579_vm11 = vcmp.eq.f32.partialorder %v359_v9, %v1434_v48  ;;  %vm280_vm12 = vcmp.lt.s32.totalorder %v241_v11, %v1430_v47 }
  0xb9   : > { %vm649_vm9 = vmand %vm585_vm5, %vm286_vm4  ;;  %vm581_vm5 = vcmp.eq.f32.partialorder %v364_v10, %v1434_v48 }
  0xba   : > { %vm711_vm7 = vmor %vm519_vm0, %vm647_vm6  ;;  %vm282_vm0 = vcmp.lt.s32.totalorder %v242_v12, %v1430_v47  ;;  %vm515_vm6 = vcmp.gt.f32.partialorder %v359_v9, %v1434_v48  ;;  %v253_v9 = vadd.s32 128, %v1400_v34  ;;  %v1907_v12 = vmov 0 }
  0xbb   : > { %vm713_vm3 = vmor %vm521_vm14, %vm649_vm9  ;;  %vm517_vm9 = vcmp.gt.f32.partialorder %v364_v10, %v1434_v48  ;;  %v1629_v37 = vpop.permute.xlu1 %473  ;;  %v469_v41 = vpop.permute.xlu0 %468  ;;  %v1905_v10 = vmov 0 }
  0xbc   : > { %vm1122_vm10 = vmpackc.low %vm713_vm3, %vm711_vm7 }
  0xbd   : > { %1123 = vmatpush1.bf16.msk.msra.mxu0 %vm1122_vm10, %v1287_v60  ;;  %vm708_vm8 = vmor %vm516_vm15, %vm580_vm2  ;;  %vm512_vm15 = vcmp.gt.f32.partialorder %v349_v13, %v1438_v49  ;;  %vm576_vm2 = vcmp.eq.f32.partialorder %v349_v13, %v1438_v49 }
  0xbe   : > { %vm710_vm4 = vmor %vm518_vm13, %vm582_vm1  ;;  %vm514_vm1 = vcmp.gt.f32.partialorder %v354_v14, %v1438_v49 }
  0xbf   : > { %vm1124_vm14 = vmpackc.low %vm710_vm4, %vm708_vm8  ;;  %vm578_vm8 = vcmp.eq.f32.partialorder %v354_v14, %v1438_v49  ;;  %v1656_v44 = vpop.permute.xlu1 %463  ;;  %v459_v50 = vpop.permute.xlu0 %458 }
  0xc0   : > { %1125 = vmatprep.subr.msk.bf16.mxu0 %vm1124_vm14, %v1287_v60  ;;  %vm643_vm7 = vmand %vm579_vm11, %vm280_vm12  ;;  %vm276_vm14 = vcmp.lt.s32.totalorder %v239_v17, %v1430_v47 }
  0xc1   : > { %vm645_vm3 = vmand %vm581_vm5, %vm282_vm0  ;;  %vm575_vm5 = vcmp.eq.f32.partialorder %v349_v13, %v1434_v48 }
  0xc2   : > { %vm707_vm10 = vmor %vm515_vm6, %vm643_vm7  ;;  %vm577_vm6 = vcmp.eq.f32.partialorder %v354_v14, %v1434_v48  ;;  %vm511_vm7 = vcmp.gt.f32.partialorder %v349_v13, %v1434_v48 }
  0xc3   : > { %vm709_vm13 = vmor %vm517_vm9, %vm645_vm3  ;;  %vm278_vm9 = vcmp.lt.s32.totalorder %v240_v18, %v1430_v47  ;;  %vm513_vm3 = vcmp.gt.f32.partialorder %v354_v14, %v1434_v48  ;;  %v1686_v53 = vpop.permute.xlu1 %453  ;;  %v449_v56 = vpop.permute.xlu0 %448 }
  0xc4   : > { %vm1126_vm4 = vmpackc.low %vm709_vm13, %vm707_vm10  ;;  %vm508_vm13 = vcmp.gt.f32.partialorder %v1540_v15, %v1438_v49 }
  0xc5   : > { %1127 = vmatpush1.bf16.msk.msra.mxu0 %vm1126_vm4, %v1287_v60  ;;  %vm704_vm11 = vmor %vm512_vm15, %vm576_vm2  ;;  %vm510_vm4 = vcmp.gt.f32.partialorder %v1544_v16, %v1438_v49 }
  0xc6   : > { %vm706_vm12 = vmor %vm514_vm1, %vm578_vm8  ;;  %vm572_vm1 = vcmp.eq.f32.partialorder %v1540_v15, %v1438_v49 }
  0xc7   : > { %vm1128_vm0 = vmpackc.low %vm706_vm12, %vm704_vm11  ;;  %vm574_vm11 = vcmp.eq.f32.partialorder %v1544_v16, %v1438_v49  ;;  %v444_v59 = vpop.permute.xlu1 %443  ;;  %v439_v63 = vpop.permute.xlu0 %438 }
  0xc8   : > { %1129 = vmatprep.subr.msk.bf16.mxu0 %vm1128_vm0, %v1287_v60  ;;  %vm639_vm10 = vmand %vm575_vm5, %vm276_vm14  ;;  %vm335_vm5 = vcmp.lt.s32.totalorder %v268_v21, %v1564_v22  ;;  %vm634_vm0 = vcmp.eq.f32.partialorder %v1558_v20, %v1438_v49 }
  0xc9   : > { %vm641_vm15 = vmand %vm577_vm6, %vm278_vm9  ;;  %vm333_vm6 = vcmp.lt.s32.totalorder %v267_v23, %v1564_v22  ;;  %vm632_vm9 = vcmp.eq.f32.partialorder %v1555_v19, %v1438_v49 }
  0xca   : > { %vm703_vm2 = vmor %vm511_vm7, %vm639_vm10 }
  0xcb   : > { %vm705_vm8 = vmor %vm513_vm3, %vm641_vm15  ;;  %vm571_vm3 = vcmp.eq.f32.partialorder %v1540_v15, %v1434_v48  ;;  %vm329_vm15 = vcmp.lt.s32.totalorder %v265_v24, %v1564_v22  ;;  %v434_v2 = vpop.permute.xlu1 %433  ;;  %v429_v5 = vpop.permute.xlu0 %428 }
  0xcc   : > { %vm1130_vm12 = vmpackc.low %vm705_vm8, %vm703_vm2  ;;  %vm628_vm2 = vcmp.eq.f32.partialorder %v1577_v26, %v1438_v49 }
  0xcd   : > { %1131 = vmatpush1.bf16.msk.msra.mxu0 %vm1130_vm12, %v1287_v60  ;;  %vm700_vm14 = vmor %vm508_vm13, %vm572_vm1  ;;  %vm272_vm13 = vcmp.lt.s32.totalorder %v1400_v34, %v1430_v47  ;;  %vm573_vm1 = vcmp.eq.f32.partialorder %v1544_v16, %v1434_v48  ;;  %vm274_vm12 = vcmp.lt.s32.totalorder %v238_v27, %v1430_v47 }
  0xce   : > { %vm702_vm7 = vmor %vm510_vm4, %vm574_vm11  ;;  %vm331_vm4 = vcmp.lt.s32.totalorder %v266_v25, %v1564_v22  ;;  %vm630_vm11 = vcmp.eq.f32.partialorder %v1584_v28, %v1438_v49 }
  0xcf   : > { %vm1132_vm10 = vmpackc.low %vm702_vm7, %vm700_vm14  ;;  %vm507_vm7 = vcmp.gt.f32.partialorder %v1540_v15, %v1434_v48  ;;  %v424_v8 = vpop.permute.xlu1 %423  ;;  %v419_v11 = vpop.permute.xlu0 %418 }
  0xd0   : > { %vm1598_vm8 = vmand %vm634_vm0, %vm335_vm5  ;;  %1133 = vmatprep.subr.msk.bf16.mxu0 %vm1132_vm10, %v1287_v60  ;;  %vm509_vm0 = vcmp.gt.f32.partialorder %v1544_v16, %v1434_v48 }
  0xd1   : > { %v1878_v29 = vsel %vm1598_vm8, 4294967295, %v1877_v29  ;;  %vm1607_vm14 = vmand %vm632_vm9, %vm333_vm6  ;;  %vm568_vm9 = vcmp.gt.f32.partialorder %v1555_v19, %v1438_v49 }
  0xd2   : > { %vm1613_vm5 = vmand %vm628_vm2, %vm329_vm15  ;;  %vm570_vm2 = vcmp.gt.f32.partialorder %v1558_v20, %v1438_v49 }
  0xd3   : > { %v1882_v31 = vsel %vm1613_vm5, 4294967295, %v1881_v31  ;;  %vm635_vm10 = vmand %vm571_vm3, %vm272_vm13 }
  0xd4   : > { %vm1622_vm8 = vmand %vm630_vm11, %vm331_vm4  ;;  %vm626_vm4 = vcmp.eq.f32.partialorder %v1629_v37, %v1438_v49  ;;  %vm1885_vm11 = vnez %v1878_v29 }
  0xd5   : > { %vm637_vm6 = vmand %vm573_vm1, %vm274_vm12  ;;  %vm327_vm1 = vcmp.lt.s32.totalorder %v264_v33, %v1564_v22 }
  0xd6   : > { %vm699_vm15 = vmor %vm507_vm7, %vm635_vm10  ;;  %vm325_vm7 = vcmp.lt.s32.totalorder %v263_v40, %v1564_v22  ;;  %vm624_vm10 = vcmp.eq.f32.partialorder %v469_v41, %v1438_v49 }
  0xd7   : > { %vm701_vm5 = vmor %vm509_vm0, %vm637_vm6  ;;  %vm567_vm0 = vcmp.gt.f32.partialorder %v1555_v19, %v1434_v48 }
  0xd8   : > { %vm1134_vm3 = vmpackc.low %vm701_vm5, %vm699_vm15  ;;  %vm569_vm5 = vcmp.gt.f32.partialorder %v1558_v20, %v1434_v48  ;;  %vm566_vm15 = vcmp.gt.f32.partialorder %v1584_v28, %v1438_v49 }
  0xd9   : > { %1135 = vmatpush1.bf16.msk.msra.mxu0 %vm1134_vm3, %v1287_v60  ;;  %vm760_vm13 = vmor %vm568_vm9, %vm1607_vm14  ;;  %vm564_vm14 = vcmp.gt.f32.partialorder %v1577_v26, %v1438_v49 }
  0xda   : > { %vm762_vm12 = vmor %vm570_vm2, %vm1885_vm11  ;;  %vm622_vm11 = vcmp.eq.f32.partialorder %v1656_v44, %v1438_v49 }
  0xdb   : > { %vm1136_vm6 = vmpackc.low %vm762_vm12, %vm760_vm13  ;;  %vm1890_vm13 = vnez %v1882_v31 }
  0xdc   : > { %1137 = vmatprep.subr.msk.bf16.mxu0 %vm1136_vm6, %v1287_v60  ;;  %vm1652_vm9 = vmand %vm626_vm4, %vm327_vm1  ;;  %vm323_vm4 = vcmp.lt.s32.totalorder %v262_v42, %v1564_v22  ;;  %v1288_v42 = vmov 1966171168  }
  0xdd   : > { %vm1661_vm2 = vmand %vm624_vm10, %vm325_vm7  ;;  %vm321_vm7 = vcmp.lt.s32.totalorder %v261_v46, %v1564_v22  ;;  %vm620_vm10 = vcmp.eq.f32.partialorder %v459_v50, %v1438_v49  ;;  %v972_v43 = vunpack.c.l.s4 %v1288_v42 }
  0xde   : > { %vm1138_vm3 = vmpackc.low %vm569_vm5, %vm567_vm0  ;;  %vm565_vm5 = vcmp.gt.f32.partialorder %v1584_v28, %v1434_v48  ;;  %vm563_vm0 = vcmp.gt.f32.partialorder %v1577_v26, %v1434_v48 }
  0xdf   : > { %1139 = vmatpush2.bf16.msk.msra.mxu0 %vm1138_vm3, %v1287_v60  ;;  %vm756_vm1 = vmor %vm564_vm14, %vm1890_vm13  ;;  %vm560_vm14 = vcmp.gt.f32.partialorder %v469_v41, %v1438_v49 }
  0xe0   : > { %vm758_vm12 = vmor %vm566_vm15, %vm1622_vm8  ;;  %vm562_vm8 = vcmp.gt.f32.partialorder %v1629_v37, %v1438_v49 }
  0xe1   : > { %vm1140_vm6 = vmpackc.low %vm758_vm12, %vm756_vm1 }
  0xe2   : > { %1141 = vmatprep.subr.msk.bf16.mxu0 %vm1140_vm6, %v1287_v60  ;;  %vm1682_vm3 = vmand %vm622_vm11, %vm323_vm4  ;;  %vm319_vm4 = vcmp.lt.s32.totalorder %v260_v51, %v1564_v22  ;;  %vm618_vm11 = vcmp.eq.f32.partialorder %v1686_v53, %v1438_v49 }
  0xe3   : > { %vm1691_vm15 = vmand %vm620_vm10, %vm321_vm7  ;;  %vm317_vm7 = vcmp.lt.s32.totalorder %v259_v54, %v1564_v22  ;;  %vm616_vm10 = vcmp.eq.f32.partialorder %v449_v56, %v1438_v49 }
  0xe4   : > { %vm1142_vm13 = vmpackc.low %vm565_vm5, %vm563_vm0  ;;  %vm561_vm5 = vcmp.gt.f32.partialorder %v1629_v37, %v1434_v48  ;;  %vm559_vm0 = vcmp.gt.f32.partialorder %v469_v41, %v1434_v48 }
  0xe5   : > { %1143 = vmatpush2.bf16.msk.msra.mxu0 %vm1142_vm13, %v1287_v60  ;;  %vm752_vm1 = vmor %vm560_vm14, %vm1661_vm2  ;;  %vm556_vm2 = vcmp.gt.f32.partialorder %v459_v50, %v1438_v49 }
  0xe6   : > { %vm754_vm12 = vmor %vm562_vm8, %vm1652_vm9  ;;  %vm558_vm9 = vcmp.gt.f32.partialorder %v1656_v44, %v1438_v49 }
  0xe7   : > { %vm1144_vm6 = vmpackc.low %vm754_vm12, %vm752_vm1 }
  0xe8   : > { %1145 = vmatprep.subr.msk.bf16.mxu0 %vm1144_vm6, %v1287_v60  ;;  %vm1711_vm14 = vmand %vm618_vm11, %vm319_vm4  ;;  %vm315_vm4 = vcmp.lt.s32.totalorder %v258_v57, %v1564_v22  ;;  %vm614_vm11 = vcmp.eq.f32.partialorder %v444_v59, %v1438_v49  ;;  %vm313_vm6 = vcmp.lt.s32.totalorder %v257_v61, %v1564_v22 }
  0xe9   : > { %vm1718_vm8 = vmand %vm616_vm10, %vm317_vm7  ;;  %vm612_vm7 = vcmp.eq.f32.partialorder %v439_v63, %v1438_v49  ;;  %vm557_vm10 = vcmp.gt.f32.partialorder %v1656_v44, %v1434_v48 }
  0xea   : > { %vm1146_vm13 = vmpackc.low %vm561_vm5, %vm559_vm0  ;;  %vm555_vm5 = vcmp.gt.f32.partialorder %v459_v50, %v1434_v48 }
  0xeb   : > { %1147 = vmatpush2.bf16.msk.msra.mxu0 %vm1146_vm13, %v1287_v60  ;;  %vm748_vm1 = vmor %vm556_vm2, %vm1691_vm15  ;;  %vm552_vm15 = vcmp.gt.f32.partialorder %v449_v56, %v1438_v49 }
  0xec   : > { %vm750_vm12 = vmor %vm558_vm9, %vm1682_vm3  ;;  %vm554_vm3 = vcmp.gt.f32.partialorder %v1686_v53, %v1438_v49 }
  0xed   : > { %vm1148_vm0 = vmpackc.low %vm750_vm12, %vm748_vm1 }
  0xee   : > { %1149 = vmatprep.subr.msk.bf16.mxu0 %vm1148_vm0, %v1287_v60  ;;  %vm1737_vm2 = vmand %vm614_vm11, %vm315_vm4  ;;  %vm311_vm4 = vcmp.lt.s32.totalorder %v256_v0, %v1564_v22  ;;  %vm610_vm11 = vcmp.eq.f32.partialorder %v434_v2, %v1438_v49  ;;  %vm309_vm0 = vcmp.lt.s32.totalorder %v255_v3, %v1564_v22 }
  0xef   : > { %vm1744_vm9 = vmand %vm612_vm7, %vm313_vm6  ;;  %vm608_vm6 = vcmp.eq.f32.partialorder %v429_v5, %v1438_v49  ;;  %vm553_vm7 = vcmp.gt.f32.partialorder %v1686_v53, %v1434_v48 }
  0xf0   : > { %vm1150_vm13 = vmpackc.low %vm557_vm10, %vm555_vm5  ;;  %vm551_vm10 = vcmp.gt.f32.partialorder %v449_v56, %v1434_v48  ;;  %v973_v56 = vunpack.c.0.s8 %v972_v43 }
  0xf1   : > { %1151 = vmatpush2.bf16.msk.msra.mxu0 %vm1150_vm13, %v1287_v60  ;;  %vm744_vm1 = vmor %vm552_vm15, %vm1718_vm8  ;;  %vm548_vm8 = vcmp.gt.f32.partialorder %v439_v63, %v1438_v49 }
  0xf2   : > { %vm746_vm12 = vmor %vm554_vm3, %vm1711_vm14  ;;  %vm550_vm14 = vcmp.gt.f32.partialorder %v444_v59, %v1438_v49  ;;  %v976_v0 = vsub.s32 %v973_v56, %v1400_v34 }
  0xf3   : > { %vm1152_vm5 = vmpackc.low %vm746_vm12, %vm744_vm1 }
  0xf4   : > { %1153 = vmatprep.subr.msk.bf16.mxu0 %vm1152_vm5, %v1287_v60  ;;  %vm1763_vm15 = vmand %vm610_vm11, %vm311_vm4  ;;  %vm307_vm4 = vcmp.lt.s32.totalorder %v254_v6, %v1564_v22  ;;  %vm606_vm11 = vcmp.eq.f32.partialorder %v424_v8, %v1438_v49  ;;  %vm305_vm5 = vcmp.lt.s32.totalorder %v253_v9, %v1564_v22 }
  0xf5   : > { %v1904_v7 = vsel %vm1763_vm15, 4294967295, %v1903_v7  ;;  %vm1769_vm3 = vmand %vm608_vm6, %vm309_vm0  ;;  %vm604_vm0 = vcmp.eq.f32.partialorder %v419_v11, %v1438_v49  ;;  %vm549_vm6 = vcmp.gt.f32.partialorder %v444_v59, %v1434_v48  ;;  %vm545_vm15 = vcmp.gt.f32.partialorder %v434_v2, %v1434_v48 }
  0xf6   : > { %v1906_v10 = vsel %vm1769_vm3, 4294967295, %v1905_v10  ;;  %vm1154_vm13 = vmpackc.low %vm553_vm7, %vm551_vm10  ;;  %vm547_vm7 = vcmp.gt.f32.partialorder %v439_v63, %v1434_v48  ;;  %vm543_vm3 = vcmp.gt.f32.partialorder %v429_v5, %v1434_v48 }
  0xf7   : > { %1155 = vmatpush2.bf16.msk.msra.mxu0 %vm1154_vm13, %v1287_v60  ;;  %vm740_vm1 = vmor %vm548_vm8, %vm1744_vm9  ;;  %vm544_vm13 = vcmp.gt.f32.partialorder %v429_v5, %v1438_v49  ;;  %vm546_vm8 = vcmp.gt.f32.partialorder %v434_v2, %v1438_v49  ;;  %v967_v2 = vmax.f32 %v1427_v45, 0.0 }
  0xf8   : > { %vm742_vm12 = vmor %vm550_vm14, %vm1737_vm2 }
  0xf9   : > { %vm1156_vm10 = vmpackc.low %vm742_vm12, %vm740_vm1  ;;  %vm1911_vm1 = vnez %v1906_v10 }
  0xfa   : > { %1157 = vmatprep.subr.msk.bf16.mxu0 %vm1156_vm10, %v1287_v60  ;;  %vm1786_vm9 = vmand %vm606_vm11, %vm307_vm4  ;;  %vm540_vm4 = vcmp.gt.f32.partialorder %v419_v11, %v1438_v49  ;;  %vm1912_vm11 = vnez %v1904_v7 }
  0xfb   : > { %v1908_v12 = vsel %vm1786_vm9, 4294967295, %v1907_v12  ;;  %vm1791_vm2 = vmand %vm604_vm0, %vm305_vm5  ;;  %vm542_vm5 = vcmp.gt.f32.partialorder %v424_v8, %v1438_v49  ;;  %vm539_vm9 = vcmp.gt.f32.partialorder %v419_v11, %v1434_v48 }
  0xfc   : > { %vm1158_vm14 = vmpackc.low %vm549_vm6, %vm547_vm7  ;;  %vm541_vm7 = vcmp.gt.f32.partialorder %v424_v8, %v1434_v48  ;;  %v920_v48 = vpop.xlane.xlu0 %919 }
  0xfd   : > { %1159 = vmatpush2.bf16.msk.msra.mxu0 %vm1158_vm14, %v1287_v60  ;;  %vm736_vm12 = vmor %vm544_vm13, %vm1911_vm1  ;;  %vm1913_vm14 = vcmask 1040384  }
  0xfe   : > { %vm738_vm10 = vmor %vm546_vm8, %vm1912_vm11  ;;  %v871_v14 = vsel %vm1913_vm14, 1.0, %v1413_v38  ;;  %vm1914_vm8 = vnez %v1908_v12 }
  0xff   : > { %vm1160_vm0 = vmpackc.low %vm738_vm10, %vm736_vm12  ;;  %v873_v49 = vpack.c.bf16 %v871_v14, %v871_v14 }
 0x100   : > { %1161 = vmatprep.subr.msk.bf16.mxu0 %vm1160_vm0, %v1287_v60  ;;  %vm1162_vm6 = vmpackc.low %vm545_vm15, %vm543_vm3 }
 0x101   : > { %1163 = vmatpush2.bf16.msk.msra.mxu0 %vm1162_vm6, %v1287_v60  ;;  %vm732_vm13 = vmor %vm540_vm4, %vm1791_vm2 }
 0x102   : > { %vm734_vm1 = vmor %vm542_vm5, %vm1914_vm8 }
 0x103   : > { %vm1164_vm11 = vmpackc.low %vm734_vm1, %vm732_vm13 }
 0x104   : > { %1165 = vmatprep.subr.msk.bf16.mxu0 %vm1164_vm11, %v1287_v60  ;;  %vm1166_vm12 = vmpackc.low %vm541_vm7, %vm539_vm9 }
 0x105   : > { %1167 = vmatpush2.bf16.msk.msra.mxu0 %vm1166_vm12, %v1287_v60  ;;  %vm1915_vm9 = vmmov %vm1913_vm14 }
 0x106   : > { %vm1916_vm2 = vmmov %vm1915_vm9 }
 0x108   : > { %908 = vmatmul.mubr.bf16.vlgmr.msra.gmra.mxu0 %v873_v49 }
 0x1c8   : > { %v909_v15 = vpop.f32.mrf.mxu0 }
 0x1c9   : > { %v921_v16 = vadd.f32 %v909_v15, %v1413_v38  ;;  %v923_v17 = vadd.f32 1.0, %v909_v15  ;;  %v947_v18 = vrot.slane %v909_v15, 1  ;;  %v953_v19 = vadd.f32 %v920_v48, %v909_v15 }
 0x1ca   : > { %v911_v20 = vpop.f32.mrf.mxu0  ;;  %vm943_vm15 = vcmp.gt.f32.partialorder %v909_v15, 0.0 }
 0x1cb   : > { %v927_v21 = vrot.slane %v921_v16, 1  ;;  %v933_v22 = vadd.f32 %v923_v17, %v920_v48  ;;  %v922_v23 = vadd.f32 %v911_v20, %v1416_v39  ;;  %v955_v24 = vsub.f32 %v953_v19, %v947_v18 }
 0x1cc   : > { %v924_v25 = vadd.f32 1.0, %v911_v20  ;;  %v948_v26 = vrot.slane %v911_v20, 1  ;;  %v913_v27 = vpop.f32.mrf.mxu0  ;;  %v954_v60 = vadd.f32 %v920_v48, %v911_v20  ;;  %v951_v33 = vsub.f32 %v920_v48, %v947_v18 }
 0x1cd   : > { %v935_v28 = vsub.f32 %v933_v22, %v927_v21  ;;  %v928_v29 = vrot.slane %v922_v23, 1  ;;  %1216 = vrcp.f32 %v955_v24  ;;  %v931_v40 = vsub.f32 %v920_v48, %v927_v21 }
 0x1ce   : > { %v934_v30 = vadd.f32 %v924_v25, %v920_v48  ;;  %v914_v31 = vpop.f32.mrf.mxu0  ;;  %v956_v38 = vsub.f32 %v954_v60, %v948_v26  ;;  %v952_v46 = vsub.f32 %v920_v48, %v948_v26  ;;  %vm944_vm3 = vcmp.gt.f32.partialorder %v911_v20, 0.0 }
 0x1cf   : > { %1218 = vrcp.f32 %v935_v28  ;;  %v932_v51 = vsub.f32 %v920_v48, %v928_v29 }
 0x1d0   : > { %v936_v32 = vsub.f32 %v934_v30, %v928_v29  ;;  %1220 = vrcp.f32 %v956_v38 }
 0x1d2   : > { %1222 = vrcp.f32 %v936_v32 }
 0x1da   : > { %v1217_v37 = vpop.eup %1216 }
 0x1db   : > { %v958_v39 = vmul.f32 %v1217_v37, %v951_v33 }
 0x1dc   : > { %v1219_v41 = vpop.eup %1218 }
 0x1dd   : > { %v938_v44 = vmul.f32 %v1219_v41, %v931_v40  ;;  %v1221_v47 = vpop.eup %1220  ;;  %v961_v50 = vsub.f32 1.0, %v958_v39 }
 0x1de   : > { %v960_v53 = vmul.f32 %v1221_v47, %v952_v46 }
 0x1df   : > { %v1223_v52 = vpop.eup %1222  ;;  %v941_v54 = vsub.f32 1.0, %v938_v44  ;;  %v963_v57 = vsel %vm943_vm15, %v961_v50, 0.0 }
 0x1e0   : > { %v940_v55 = vmul.f32 %v1223_v52, %v932_v51  ;;  %v962_v58 = vsub.f32 1.0, %v960_v53 }
 0x1e1   : > { %v965_v62 = vsub.f32 %v941_v54, %v963_v57 }
 0x1e2   : > { %v942_v59 = vsub.f32 1.0, %v940_v55  ;;  %v964_v61 = vsel %vm944_vm3, %v962_v58, 0.0 }
 0x1e4   : > { %v966_v63 = vsub.f32 %v942_v59, %v964_v61 }
 0x1e6   : > { %v970_v1 = vcombine.low %v965_v62, %v966_v63 }
 0x1e8   : > { %v977_v3 = vrot.slane %v970_v1, %v976_v0 }
 0x1ea   : > { %v984_v4 = vrot.slane %v977_v3, %v976_v0 }
 0x1ec   : > { %v986_v5 = vmul.f32 %v984_v4, %v967_v2 }
 0x1ee   : > { %v991_v6 = vrot.slane %v986_v5, %v1404_v35  ;;  %v995_v7 = vrot.slane %v986_v5, %v1407_v36 }
 0x1f0   : > { %v998_v8 = vsel %vm1915_vm9, %v991_v6, 0.0  ;;  %v999_v9 = vsel %vm1916_vm2, %v995_v7, 0.0 }
 0x1f1   : > { %v1000_v10 = vadd.f32 %v999_v9, %v998_v8 }
 0x1f3   : > { %1001 = vadd.xlane.f32.xlu1 %v1000_v10 }
 0x27c   : > { %v1002_v34 = vpop.xlane.xlu1 %1001 }
 0x27d   : > { %1003 = vst [vmem:[%s188_s10] sm:$0x1] %v1002_v34 }
 0x27e   : > { %1237 = shalt.err (!%p1234_p3)
}
 0x27f   : > { %s1238_s29 = scalar_lea.hbm %s1015_s24, 16  ;;  %s1242_s5 = scalar_lea.hbm %s1867_s3, 32 }
 0x280   : > { %p1239_p4 = scmp.ne.s32.totalorder %s1015_s24, %s1238_s29  ;;  %p1243_p9 = scmp.lt.s32.totalorder %s1015_s24, %s1867_s3 }
 0x281   : > { %p1244_p10 = scmp.lt.s32.totalorder %s1242_s5, %s1238_s29 }
 0x282   : > { %p1240_p7 = pnand %p1239_p4, %p1348_p5 }
 0x283   : > { %p1245_p11 = por %p1244_p10, %p1243_p9 }
 0x284   : > { %p1241_p8 = pneg %p1240_p7 }
 0x286   : > { %p1246_p12 = pnand %p1245_p11, %p1241_p8 }
 0x288   : > { %1249 = shalt.err (!%p1246_p12)
}
 0x289   : > { %1172 = dma.vmem_to_hbm [thread:$0]  (%p1348_p5), %s1826_s11, 16, %s1015_s24, %s1005_s25  }
 0x28a PF: > { %p1178_p13 = scmp.ge.s32.totalorder %s1284_s15, 2  ;;  %s1029_s8 = sand.u32 1, %s1272_s12  }
 0x28b   : > { %s1030_s9 = scalar_lea.sflag [#allocation3], %s1029_s8 }
 0x28c   : > { %p1175_p0 = pnand %p1178_p13, %p1352_p6 }
 0x28e   : > { %p1176_p1 = pneg %p1175_p0 }
 0x290   : > { %1267 = dma.done.wait (%p1176_p1), %s1030_s9, 16  }
 0x291   : > { %1269 = vsyncadd (%p1176_p1), %s1030_s9, 4294967280  ;;  %p13_p2 = scmp.ge.s32.totalorder %s1335_s18, 4   ;;  %s1917_s12 = smov %s1276_s13 }
 0x292   : > { %s1918_s13 = smov %s1280_s14  ;;  %s1919_s14 = smov %s1346_s21 }
 0x293   : > { %s1920_s15 = smov %s1335_s18  ;;  %15 = sbr.rel (!%p13_p2) target bundleno = 3 (0x3), region = 73 }
 0x298   :  { %1034 = vsyncpa [#allocation3], 1 }
 0x299   :  { %1036 = vsyncpa [#allocation3 + $0x1], 1 }

</bundles_post_ra>
